<compile_context>
chip_gen: v7x
topology: tpu7x:2x2x1
jax: 0.10.0
libtpu: 0.0.40
codegen_flags: <defaults>
</compile_context>

<pallas_src>
import functools

import jax
import jax.numpy as jnp
from jax.experimental import pallas as pl
from jax.experimental.pallas import tpu as pltpu


def _round_up(x, m):
    return ((x + m - 1) // m) * m


def decoder_kernel(combo_ref, w1_ref, b1_ref, w2_ref, b2_ref, y_ref, h_ref):
    # Stage 1 (combo_fc): compute only on the first vocab tile of each row
    # tile; result is cached in VMEM scratch and reused for every vocab tile j
    # (vocab axis is the innermost grid axis and marked "arbitrary").
    @pl.when(pl.program_id(1) == 0)
    def _():
        h = (jnp.dot(combo_ref[...], w1_ref[...],
                     preferred_element_type=jnp.float32)
             + b1_ref[...])
        h_ref[...] = h.astype(h_ref.dtype)

    # Stage 2 (fc1): current vocab tile of W2 / b2.
    y = (jnp.dot(h_ref[...], w2_ref[...],
                 preferred_element_type=jnp.float32)
         + b2_ref[...])
    y_ref[...] = y.astype(y_ref.dtype)


@functools.partial(jax.jit, static_argnames=("Mp", "K", "H", "Vp", "tm", "tv"))
def _decoder_call(combo2d, w1, b1, w2, b2, *, Mp, K, H, Vp, tm, tv):
    grid = (Mp // tm, Vp // tv)   # Mp/Vp already padded to tile multiples
    return pl.pallas_call(
        decoder_kernel,
        out_shape=jax.ShapeDtypeStruct((Mp, Vp), jnp.float32),
        grid_spec=pltpu.PrefetchScalarGridSpec(
            num_scalar_prefetch=0,
            grid=grid,
            in_specs=[
                pl.BlockSpec((tm, K), lambda i, j: (i, 0)),    # [p | dropped]
                pl.BlockSpec((K, H), lambda i, j: (0, 0)),     # W1^T (resident)
                pl.BlockSpec((1, H), lambda i, j: (0, 0)),     # b1
                pl.BlockSpec((H, tv), lambda i, j: (0, j)),    # W2^T vocab tile
                pl.BlockSpec((1, tv), lambda i, j: (0, j)),    # b2 vocab tile
            ],
            out_specs=pl.BlockSpec((tm, tv), lambda i, j: (i, j)),
            scratch_shapes=[pltpu.VMEM((tm, H), jnp.bfloat16)],  # cached h
        ),
        compiler_params=pltpu.CompilerParams(
            # row tiles shard across cores; vocab axis must stay sequential so
            # the h-scratch legitimately persists across j.
            dimension_semantics=("parallel", "arbitrary"),
            # explicit budget, safe on v7x's 64 MiB physical VMEM as well.
            vmem_limit_bytes=48 * 1024 * 1024),
    )(combo2d, w1, b1, w2, b2)


def init_params(key, emb_dim, num_topic, hidden_dim, vocab_sz, out_dp=0.4):
    """Deterministic synthetic parameters (shapes match the torch module)."""
    k1, k2, k3, k4 = jax.random.split(key, 4)
    # combo_fc: Linear(num_topic + emb_dim, hidden_dim), stored as W^T with
    # topic rows first then emb rows — matching torch.cat((p, out), dim=2).
    w1 = 0.02 * jax.random.normal(k1, (num_topic + emb_dim, hidden_dim),
                                  jnp.float32)
    b1 = 0.02 * jax.random.normal(k2, (1, hidden_dim), jnp.float32)
    # fc1: Linear(hidden_dim, vocab_sz), stored as W^T.
    w2 = 0.02 * jax.random.normal(k3, (hidden_dim, vocab_sz), jnp.float32)
    b2 = 0.02 * jax.random.normal(k4, (1, vocab_sz), jnp.float32)
    return dict(w1=w1, b1=b1, w2=w2, b2=b2, out_dp=out_dp)


def dropout_linear_decoder_forward(params, out, hidden, raw, dropped, p,
                                   p_no_drop, KL, msl, dropout_key,
                                   return_states=False):
    msl_, bs, E = out.shape
    assert msl_ == msl
    T = p.shape[-1]
    H = params["b1"].shape[-1]
    V = params["b2"].shape[-1]
    K = T + E
    M = msl * bs

    # RNNDropout: one Bernoulli mask per (batch, feature), shared across the
    # seq dim, scaled by 1/keep (training-mode semantics, deterministic key).
    keep = 1.0 - params["out_dp"]
    mask = (jax.random.bernoulli(dropout_key, keep, (1, bs, E)).astype(out.dtype)
            / keep)
    out_dropped = out * mask                       # broadcasts over msl
    dropped = list(dropped) + [out_dropped]        # dropped.append(out_dp(out))

    # `hidden_rp = hidden[-1].repeat(msl, 1, 1)` in the torch code is dead code
    # (never consumed), so it is intentionally skipped here.

    # combo = cat((p, out_dropped), dim=2) -> (M, K), bf16 for the MXU.
    combo = jnp.concatenate([p, out_dropped], axis=-1).reshape(M, K)
    combo_bf16 = combo.astype(jnp.bfloat16)
    w1_bf16 = params["w1"].astype(jnp.bfloat16)
    w2_bf16 = params["w2"].astype(jnp.bfloat16)

    # Tile selection: cap row tile, keep it a multiple of 16 (bf16 sublanes);
    # lane-dense vocab tiles up to 512; pad so the grid covers everything
    # (no floor-division tail loss).
    tm = min(256, _round_up(M, 16))
    Mp = _round_up(M, tm)
    tv = min(512, _round_up(V, 128))
    Vp = _round_up(V, tv)

    combo_p = jnp.pad(combo_bf16, ((0, Mp - M), (0, 0)))
    w2_p = jnp.pad(w2_bf16, ((0, 0), (0, Vp - V)))
    b2_p = jnp.pad(params["b2"], ((0, 0), (0, Vp - V)))

    y2d = _decoder_call(combo_p, w1_bf16, params["b1"], w2_p, b2_p,
                        Mp=Mp, K=K, H=H, Vp=Vp, tm=tm, tv=tv)
    y = y2d[:M, :V].reshape(msl, bs, V)

    if return_states:
        return (y, hidden, raw, dropped, p_no_drop, KL)
    return (y, p_no_drop, KL)


if __name__ == "__main__":
    # Small shapes implied by the module: seq-first (msl, batch, features).
    msl, bs = 8, 2
    emb_dim, num_topic, hidden_dim, vocab_sz = 32, 16, 32, 128

    root = jax.random.PRNGKey(0)
    kp, ko, kpp, kd = jax.random.split(root, 4)

    params = init_params(kp, emb_dim, num_topic, hidden_dim, vocab_sz,
                         out_dp=0.4)

    out = jax.random.normal(ko, (msl, bs, emb_dim), jnp.float32)
    p = jax.random.normal(kpp, (msl, bs, num_topic), jnp.float32)
    p_no_drop = p
    hidden = [jnp.zeros((1, bs, hidden_dim), jnp.float32)]
    raw, dropped_list = [], []
    KL = jnp.float32(0.0)

    y, p_nd, kl = dropout_linear_decoder_forward(
        params, out, hidden, raw, dropped_list, p, p_no_drop, KL, msl,
        dropout_key=kd)
    jax.block_until_ready(y)

    # Pure-JAX reference following the same bf16-operand / f32-accumulate math.
    keep = 1.0 - params["out_dp"]
    mask = (jax.random.bernoulli(kd, keep, (1, bs, emb_dim)).astype(jnp.float32)
            / keep)
    dropped_ref = out * mask
    combo_ref = jnp.concatenate([p, dropped_ref], axis=-1).reshape(
        msl * bs, num_topic + emb_dim).astype(jnp.bfloat16)
    h_ref = (jnp.dot(combo_ref, params["w1"].astype(jnp.bfloat16),
                     preferred_element_type=jnp.float32) + params["b1"])
    y_ref = (jnp.dot(h_ref.astype(jnp.bfloat16),
                     params["w2"].astype(jnp.bfloat16),
                     preferred_element_type=jnp.float32) + params["b2"])
    y_ref = y_ref.reshape(msl, bs, vocab_sz)

    assert y.shape == (msl, bs, vocab_sz)
    assert jnp.allclose(y, y_ref, atol=1e-2, rtol=1e-2), \
        float(jnp.max(jnp.abs(y - y_ref)))

    print("KERNEL_OK")
</pallas_src>

<mosaic_0001>
module attributes {stable_mosaic.version = 11 : i64} {
  func.func @decoder_kernel(%arg0: i32, %arg1: i32, %arg2: memref<16x48xbf16, #tpu.memory_space<vmem>>, %arg3: memref<48x32xbf16, #tpu.memory_space<vmem>>, %arg4: memref<1x32xf32, #tpu.memory_space<vmem>>, %arg5: memref<32x128xbf16, #tpu.memory_space<vmem>>, %arg6: memref<1x128xf32, #tpu.memory_space<vmem>>, %arg7: memref<16x128xf32, #tpu.memory_space<vmem>>, %arg8: memref<16x32xbf16, #tpu.memory_space<vmem>>) attributes {dimension_semantics = [#tpu.dimension_semantics<parallel>, #tpu.dimension_semantics<arbitrary>], iteration_bounds = array<i64: 1, 1>, scalar_prefetch = 0 : i64, scratch_operands = 1 : i64, tpu.core_type = #tpu.core_type<tc>, window_params = [{transform_indices = @transform_0, window_bounds = array<i64: 16, 48>}, {pipeline_mode = #tpu.pipeline_mode<synchronous>, transform_indices = @transform_1, window_bounds = array<i64: 48, 32>}, {pipeline_mode = #tpu.pipeline_mode<synchronous>, transform_indices = @transform_2, window_bounds = array<i64: 1, 32>}, {transform_indices = @transform_3, window_bounds = array<i64: 32, 128>}, {transform_indices = @transform_4, window_bounds = array<i64: 1, 128>}, {transform_indices = @transform_5, window_bounds = array<i64: 16, 128>}]} {
    %c0_i32 = arith.constant 0 : i32
    %0 = arith.cmpi eq, %arg1, %c0_i32 : i32
    %1 = arith.extui %0 : i1 to i32
    %c0_i32_0 = arith.constant 0 : i32
    %2 = arith.cmpi ne, %1, %c0_i32_0 : i32
    scf.if %2 {
      %c0_8 = arith.constant 0 : index
      %c0_9 = arith.constant 0 : index
      %10 = vector.load %arg2[%c0_8, %c0_9] : memref<16x48xbf16, #tpu.memory_space<vmem>>, vector<16x48xbf16>
      %c0_10 = arith.constant 0 : index
      %c0_11 = arith.constant 0 : index
      %11 = vector.load %arg3[%c0_10, %c0_11] : memref<48x32xbf16, #tpu.memory_space<vmem>>, vector<48x32xbf16>
      %cst_12 = arith.constant dense<0.000000e+00> : vector<16x32xf32>
      %12 = tpu.matmul %10, %11, %cst_12 {dimension_numbers = #tpu.dot_dimension_numbers<[1], [0], [0], [1], [0, 0, 1, 1], [], []>} : vector<16x48xbf16>, vector<48x32xbf16>, vector<16x32xf32> -> vector<16x32xf32>
      %c0_13 = arith.constant 0 : index
      %c0_14 = arith.constant 0 : index
      %13 = vector.load %arg4[%c0_13, %c0_14] : memref<1x32xf32, #tpu.memory_space<vmem>>, vector<1x32xf32>
      %14 = vector.broadcast %13 : vector<1x32xf32> to vector<16x32xf32>
      %15 = arith.addf %12, %14 : vector<16x32xf32>
      %16 = arith.truncf %15 : vector<16x32xf32> to vector<16x32xbf16>
      %c0_15 = arith.constant 0 : index
      %c0_16 = arith.constant 0 : index
      %17 = vector.load %arg8[%c0_15, %c0_16] : memref<16x32xbf16, #tpu.memory_space<vmem>>, vector<16x32xbf16>
      tpu.vector_store %arg8[%c0_15, %c0_16], %16 {strides = array<i32>} : memref<16x32xbf16, #tpu.memory_space<vmem>>, vector<16x32xbf16>,
    } else {
    }
    %c0 = arith.constant 0 : index
    %c0_1 = arith.constant 0 : index
    %3 = vector.load %arg8[%c0, %c0_1] : memref<16x32xbf16, #tpu.memory_space<vmem>>, vector<16x32xbf16>
    %c0_2 = arith.constant 0 : index
    %c0_3 = arith.constant 0 : index
    %4 = vector.load %arg5[%c0_2, %c0_3] : memref<32x128xbf16, #tpu.memory_space<vmem>>, vector<32x128xbf16>
    %cst = arith.constant dense<0.000000e+00> : vector<16x128xf32>
    %5 = tpu.matmul %3, %4, %cst {dimension_numbers = #tpu.dot_dimension_numbers<[1], [0], [0], [1], [0, 0, 1, 1], [], []>} : vector<16x32xbf16>, vector<32x128xbf16>, vector<16x128xf32> -> vector<16x128xf32>
    %c0_4 = arith.constant 0 : index
    %c0_5 = arith.constant 0 : index
    %6 = vector.load %arg6[%c0_4, %c0_5] : memref<1x128xf32, #tpu.memory_space<vmem>>, vector<1x128xf32>
    %7 = vector.broadcast %6 : vector<1x128xf32> to vector<16x128xf32>
    %8 = arith.addf %5, %7 : vector<16x128xf32>
    %c0_6 = arith.constant 0 : index
    %c0_7 = arith.constant 0 : index
    %9 = vector.load %arg7[%c0_6, %c0_7] : memref<16x128xf32, #tpu.memory_space<vmem>>, vector<16x128xf32>
    tpu.vector_store %arg7[%c0_6, %c0_7], %8 {strides = array<i32>} : memref<16x128xf32, #tpu.memory_space<vmem>>, vector<16x128xf32>,
    return
  }
  func.func @transform_0(%arg0: i32, %arg1: i32) -> (i32, i32) {
    %c0_i32 = arith.constant 0 : i32
    %c0_i32_0 = arith.constant 0 : i32
    return %arg0, %c0_i32 : i32, i32
  }
  func.func @transform_1(%arg0: i32, %arg1: i32) -> (i32, i32) {
    %c0_i32 = arith.constant 0 : i32
    %c0_i32_0 = arith.constant 0 : i32
    %c0_i32_1 = arith.constant 0 : i32
    return %c0_i32, %c0_i32_0 : i32, i32
  }
  func.func @transform_2(%arg0: i32, %arg1: i32) -> (i32, i32) {
    %c0_i32 = arith.constant 0 : i32
    %c0_i32_0 = arith.constant 0 : i32
    %c0_i32_1 = arith.constant 0 : i32
    return %c0_i32, %c0_i32_0 : i32, i32
  }
  func.func @transform_3(%arg0: i32, %arg1: i32) -> (i32, i32) {
    %c0_i32 = arith.constant 0 : i32
    %c0_i32_0 = arith.constant 0 : i32
    return %c0_i32, %arg1 : i32, i32
  }
  func.func @transform_4(%arg0: i32, %arg1: i32) -> (i32, i32) {
    %c0_i32 = arith.constant 0 : i32
    %c0_i32_0 = arith.constant 0 : i32
    return %c0_i32, %arg1 : i32, i32
  }
  func.func @transform_5(%arg0: i32, %arg1: i32) -> (i32, i32) {
    %c0_i32 = arith.constant 0 : i32
    return %arg0, %arg1 : i32, i32
  }
}

</mosaic_0001>

<bundles_post_ra>
// kernel: _decoder_call.1
= control target key start
LH: loop header
LB: loop body
LE: loop exit
PB: predicated region body
PF: predicated region fallthrough
CT: control target
= control target key end

     0   :  { %v269_v1 = vmov 0.0   ;;  %vm270_vm0 = vmmov 0   ;;  %s340_s0 = inlined_call_operand.vmem [shape: bf16[16,48], index: 0, kind: input, shape index: {}]   ;;  %s341_s1 = inlined_call_operand.vmem [shape: bf16[48,32], index: 1, kind: input, shape index: {}]   ;;  %s342_s2 = inlined_call_operand.vmem [shape: f32[1,32], index: 2, kind: input, shape index: {}]   ;;  %s343_s3 = inlined_call_operand.vmem [shape: bf16[32,128], index: 3, kind: input, shape index: {}]   ;;  %s344_s4 = inlined_call_operand.vmem [shape: f32[1,128], index: 4, kind: input, shape index: {}]   ;;  %s345_s5 = inlined_call_operand.hbm [shape: f32[16,128], index: 5, kind: output, shape index: {}]  }
   0x1   :  { %v239_v0 = vld [vmem:[%s341_s1] sm:$0xff]   ;;  %216 = vmatprep.subr.bf16.mxu0 %v269_v1  ;;  %226 = vmatprep.subr.bf16.mxu1 %v269_v1  ;;  %v240_v2 = vld [vmem:[%s341_s1 + $0x8] sm:$0xff]  }
   0x2   :  { %217 = vmatpush3.bf16.msra.mxu0 %v239_v0  ;;  %222 = vmatprep.mubr.msk.bf16.mxu0 %vm270_vm0, %v269_v1 }
   0x3   :  { %218 = vmatprep.subr.bf16.mxu0 %v269_v1  ;;  %230 = vmatprep.mubr.msk.bf16.mxu1 %vm270_vm0, %v269_v1 }
   0x4   :  { %10 = vsyncpa [#allocation4], 0  ;;  %v241_v3 = vld [vmem:[%s341_s1 + $0x10] sm:$0xff]   ;;  %v242_v4 = vld [vmem:[%s340_s0] sm:$0xff]   ;;  %vm64_vm1 = vcmask 392192   ;;  %vm110_vm2 = vcmask 261120  }
   0x5   :  { %v243_v5 = vld [vmem:[%s343_s3] sm:$0xff]   ;;  %v244_v6 = vld [vmem:[%s343_s3 + $0x8] sm:$0xff]   ;;  %s271_s3 = smov [#allocation3]  }
   0x6   :  { %219 = vmatpush3.bf16.msra.mxu0 %v240_v2  ;;  %227 = vmatpush3.bf16.msra.mxu1 %v243_v5  ;;  %v199_v7 = vld [vmem:[%s342_s2] ss:$0 sm:$0xff]  ;;  %s188_s7 = sshll.u32 %s271_s3, 4  ;;  %s189_s7 = int_to_ptr.vmem [resolvable:$true] %s188_s7 }
   0x7   :  { %220 = vmatprep.subr.bf16.mxu0 %v269_v1  ;;  %228 = vmatprep.subr.bf16.mxu1 %v269_v1  ;;  %v205_v16 = vld [vmem:[%s344_s4] ss:$0 sm:$0xff]  ;;  %s245_s2 = scalar_lea.vmem %s189_s7, 256  ;;  %p250_p1 = scmp.lt.s32.totalorder %s189_s7, %s189_s7 }
   0x8   :  { %p246_p0 = scmp.ne.s32.totalorder %s189_s7, %s245_s2  ;;  %p251_p2 = scmp.lt.s32.totalorder %s245_s2, %s245_s2 }
   0xa   :  { %221 = vmatpush3.bf16.msra.mxu0 %v241_v3  ;;  %229 = vmatpush3.bf16.msra.mxu1 %v244_v6  ;;  %p252_p3 = por %p251_p2, %p250_p1 }
   0xc   :  { %p253_p4 = pnand %p252_p3, %p246_p0 }
   0xd   :  { %223 = vmatmul.mubr.msk.bf16.vlgmr.msra.gmra.mrb[0].mxu0 %vm64_vm1, %v242_v4 }
  0xe0   :  { %v102_v8 = vpop.f32.mrb[0].mxu0 }
  0xe1   :  { %v224_v9 = vpop.f32.mrb[1].mxu0  ;;  %v103_v11 = vadd.f32 %v199_v7, %v102_v8 }
  0xe2   :  { %v105_v10 = vpop.f32.mrb[2].mxu0 }
  0xe3   :  { %v106_v12 = vadd.f32 %v199_v7, %v105_v10  ;;  %v225_v13 = vpop.f32.mrb[3].mxu0 }
  0xe5   :  { %v109_v14 = vpack.c.bf16 %v106_v12, %v103_v11 }
  0xe7   :  { %111 = vst.msk [vmem:[#allocation2] sm:$0xff] %vm110_vm2, %v109_v14 }
  0xee   :  { %v112_v15 = vld [vmem:[#allocation2] sm:$0xff] }
  0xef   :  { %231 = vmatmul.mubr.msk.bf16.vlgmr.msra.gmra.mrb[0].mxu1 %vm110_vm2, %v112_v15 }
 0x1c2   :  { %v174_v17 = vpop.f32.mrb[0].mxu1 }
 0x1c3   :  { %v175_v18 = vadd.f32 %v205_v16, %v174_v17  ;;  %v232_v19 = vpop.f32.mrb[1].mxu1 }
 0x1c4   :  { %v177_v20 = vpop.f32.mrb[2].mxu1 }
 0x1c5   :  { %181 = vst [vmem:[#allocation3] sm:$0xff] %v175_v18  ;;  %v178_v21 = vadd.f32 %v205_v16, %v177_v20  ;;  %v233_v22 = vpop.f32.mrb[3].mxu1 }
 0x1c7   :  { %182 = vst [vmem:[#allocation3 + $0x8] sm:$0xff] %v178_v21 }
 0x1c8   :  { %256 = shalt.err (!%p253_p4)
}
 0x1c9   :  { %s257_s9 = scalar_lea.hbm %s345_s5, 256 }
 0x1ca   :  { %p258_p5 = scmp.ne.s32.totalorder %s345_s5, %s257_s9  ;;  %p261_p6 = scmp.lt.u32.totalorder %s257_s9, %s345_s5 }
 0x1cc   :  { %p263_p7 = pnand %p261_p6, %p258_p5 }
 0x1ce   :  { %266 = shalt.err (!%p263_p7)
}
 0x1cf   :  { %s272_s14 = smov 128   ;;  %s273_s15 = smov 8  }
 0x1d0   :  { %194 = dma.vmem_to_hbm [thread:$0]  %s189_s7, 256, %s345_s5, [#allocation4], %s272_s14, %s272_s14, %s273_s15  }
 0x1d1   :  { %267 = dma.done.wait [#allocation4], 256  }
 0x1d2   :  { %268 = vsyncadd [#allocation4], 4294967040 }
 0x1d3   :  { %198 = vsyncpa [#allocation4], 1 }

</bundles_post_ra>
